<compile_context>
chip_gen: v7x
topology: tpu7x:2x2x1
jax: 0.10.0
libtpu: 0.0.40
codegen_flags: <defaults>
</compile_context>

<pallas_src>
import functools

import jax
import jax.numpy as jnp
from jax.experimental import pallas as pl
from jax.experimental.pallas import tpu as pltpu


def _conv1d_kernel_acc(x_ref, w_ref, b_ref, o_ref, acc_ref, *, precision):
    """General path: K split over grid axis 2, resident f32 VMEM accumulator."""
    k = pl.program_id(2)

    @pl.when(k == 0)
    def _():
        # Fold bias into the accumulator init (free: we'd write zeros anyway).
        acc_ref[...] = jnp.broadcast_to(
            b_ref[...].astype(jnp.float32), acc_ref.shape
        )

    acc_ref[...] += jnp.dot(
        x_ref[...],
        w_ref[...],
        preferred_element_type=jnp.float32,
        precision=precision,
    )

    @pl.when(k == pl.num_programs(2) - 1)
    def _():
        o_ref[...] = acc_ref[...].astype(o_ref.dtype)


def _conv1d_kernel_single(x_ref, w_ref, b_ref, o_ref, *, precision):
    """Fast path: whole K in one block -> no accumulator round-trip."""
    acc = jnp.dot(
        x_ref[...],
        w_ref[...],
        preferred_element_type=jnp.float32,
        precision=precision,
    )
    o_ref[...] = (acc + b_ref[...].astype(jnp.float32)).astype(o_ref.dtype)


def conv1d_rf1(x, w, b, *, tm=1024, tn=512, tk=1024, precision=None):
    """y = x @ w + b over the last axis of x (torch.addmm semantics).

    x: (..., in_dim)      float32 or bfloat16
    w: (in_dim, out_dim)  same dtype as x (f32 accumulation inside the kernel)
    b: (out_dim,)
    returns: (..., out_dim) with x.dtype
    """
    in_dim = x.shape[-1]
    out_dim = w.shape[-1]
    lead_shape = x.shape[:-1]

    x2d = x.reshape(-1, in_dim)  # (M, K)
    m = x2d.shape[0]

    if precision is None:
        # torch.addmm is true f32; bf16 callers get native MXU speed.
        precision = (
            jax.lax.Precision.HIGHEST
            if x2d.dtype == jnp.float32
            else jax.lax.Precision.DEFAULT
        )

    # Full-dim blocks when the dim is small (always legal regardless of the
    # (8,128) rule), otherwise aligned tiles for pipelining.
    tm = m if m <= tm else tm
    tn = out_dim if out_dim <= tn else tn
    tk = in_dim if in_dim <= tk else tk

    # Correctness: when K is tiled, a partial last K block would read
    # implementation-defined out-of-bounds data that gets multiplied and
    # accumulated into VALID outputs.  Zero-pad K to a tile multiple instead.
    # (Partial M/N blocks are safe: garbage only reaches dropped OOB writes.)
    k_pad = (-in_dim) % tk
    if k_pad:
        x2d = jnp.pad(x2d, ((0, 0), (0, k_pad)))
        w = jnp.pad(w, ((0, k_pad), (0, 0)))
    k_dim = in_dim + k_pad

    b2d = b.reshape(1, out_dim)  # lane-dense broadcast row

    grid = (pl.cdiv(m, tm), pl.cdiv(out_dim, tn), k_dim // tk)
    kt = grid[2]

    dsize = jnp.dtype(x2d.dtype).itemsize
    tile_bytes = (
        2 * (tm * tk + tk * tn) * dsize          # double-buffered x / w tiles
        + 2 * (tm * tn + tn) * dsize             # output tiles + bias row
        + (tm * tn * 4 if kt > 1 else 0)         # f32 accumulator scratch
    )
    try:
        vmem_cap = int(pltpu.get_tpu_info().vmem_capacity_bytes)
    except Exception:  # interpret mode / non-TPU query failure
        vmem_cap = 64 << 20
    # Leave ~25% headroom for Mosaic internal scratch (v7x: 64 MiB per TC).
    limit_cap = min(vmem_cap * 3 // 4, 100 << 20)
    vmem_limit = int(min(max(tile_bytes + (8 << 20), 32 << 20), limit_cap))

    cost = pl.CostEstimate(
        flops=2 * m * in_dim * out_dim,
        transcendentals=0,
        bytes_accessed=dsize
        * (m * in_dim + in_dim * out_dim + m * out_dim + out_dim),
    )

    in_specs = [
        pl.BlockSpec((tm, tk), lambda i, j, k: (i, k)),  # x tile
        pl.BlockSpec((tk, tn), lambda i, j, k: (k, j)),  # w tile (resident when K,N fit one block)
        pl.BlockSpec((1, tn), lambda i, j, k: (0, j)),   # bias row
    ]
    out_spec = pl.BlockSpec((tm, tn), lambda i, j, k: (i, j))

    if kt > 1:
        kernel = functools.partial(_conv1d_kernel_acc, precision=precision)
        scratch = [pltpu.VMEM((tm, tn), jnp.float32)]
    else:
        kernel = functools.partial(_conv1d_kernel_single, precision=precision)
        scratch = []

    out = pl.pallas_call(
        kernel,
        out_shape=jax.ShapeDtypeStruct((m, out_dim), x.dtype),
        grid_spec=pltpu.PrefetchScalarGridSpec(
            num_scalar_prefetch=0,
            grid=grid,
            in_specs=in_specs,
            out_specs=out_spec,
            scratch_shapes=scratch,
        ),
        compiler_params=pltpu.CompilerParams(
            dimension_semantics=("parallel", "parallel", "arbitrary"),
            vmem_limit_bytes=vmem_limit,
        ),
        cost_estimate=cost,
    )(x2d, w, b2d)

    return out.reshape(*lead_shape, out_dim)


if __name__ == "__main__":
    key = jax.random.PRNGKey(0)
    kx, kw, kx2, kw2 = jax.random.split(key, 4)

    # --- Small, module-like shapes: batch=2, seq=8, in_dim=32, out_dim=64 ---
    batch, seq, in_dim, out_dim = 2, 8, 32, 64
    # Parameter init mirroring the module: w ~ Normal(0, 0.02), b = zeros.
    w = 0.02 * jax.random.normal(kw, (in_dim, out_dim), dtype=jnp.float32)
    b = jnp.zeros((out_dim,), dtype=jnp.float32)
    x = jax.random.normal(kx, (batch, seq, in_dim), dtype=jnp.float32)

    y = conv1d_rf1(x, w, b)
    jax.block_until_ready(y)

    y_ref = (x.reshape(-1, in_dim) @ w + b).reshape(batch, seq, out_dim)
    assert y.shape == (batch, seq, out_dim)
    assert jnp.allclose(y, y_ref, atol=1e-4, rtol=1e-4), "small-shape mismatch"

    # --- Tiled path: partial M/N tiles, zero-padded+tiled K, multi-step
    #     accumulator with bias folded into the k==0 init. ---
    M2, K2, N2 = 300, 200, 192
    x2 = jax.random.normal(kx2, (M2, K2), dtype=jnp.float32)
    w2 = 0.02 * jax.random.normal(kw2, (K2, N2), dtype=jnp.float32)
    b2 = 0.01 * jnp.arange(N2, dtype=jnp.float32)
    y2 = conv1d_rf1(x2, w2, b2, tm=128, tn=128, tk=128)
    jax.block_until_ready(y2)
    y2_ref = x2 @ w2 + b2
    # Loose enough to be robust to matmul precision config, tight enough to
    # catch any partial-tile / K-padding / accumulation bug.
    assert jnp.allclose(y2, y2_ref, atol=1e-2, rtol=1e-2), "tiled-path mismatch"

    print("KERNEL_OK")
</pallas_src>

<mosaic_0001>
module attributes {stable_mosaic.version = 11 : i64} {
  func.func @_conv1d_kernel_single(%arg0: i32, %arg1: i32, %arg2: i32, %arg3: memref<16x32xf32, #tpu.memory_space<vmem>>, %arg4: memref<32x64xf32, #tpu.memory_space<vmem>>, %arg5: memref<1x64xf32, #tpu.memory_space<vmem>>, %arg6: memref<16x64xf32, #tpu.memory_space<vmem>>) attributes {dimension_semantics = [#tpu.dimension_semantics<parallel>, #tpu.dimension_semantics<parallel>, #tpu.dimension_semantics<arbitrary>], iteration_bounds = array<i64: 1, 1, 1>, scalar_prefetch = 0 : i64, scratch_operands = 0 : i64, tpu.core_type = #tpu.core_type<tc>, window_params = [{transform_indices = @transform_0, window_bounds = array<i64: 16, 32>}, {transform_indices = @transform_1, window_bounds = array<i64: 32, 64>}, {transform_indices = @transform_2, window_bounds = array<i64: 1, 64>}, {transform_indices = @transform_3, window_bounds = array<i64: 16, 64>}]} {
    %c0 = arith.constant 0 : index
    %c0_0 = arith.constant 0 : index
    %0 = vector.load %arg3[%c0, %c0_0] : memref<16x32xf32, #tpu.memory_space<vmem>>, vector<16x32xf32>
    %c0_1 = arith.constant 0 : index
    %c0_2 = arith.constant 0 : index
    %1 = vector.load %arg4[%c0_1, %c0_2] : memref<32x64xf32, #tpu.memory_space<vmem>>, vector<32x64xf32>
    %cst = arith.constant dense<0.000000e+00> : vector<16x64xf32>
    %2 = tpu.matmul %0, %1, %cst {dimension_numbers = #tpu.dot_dimension_numbers<[1], [0], [0], [1], [0, 0, 1, 1], [], []>, precision = #tpu.contract_precision<fp32>} : vector<16x32xf32>, vector<32x64xf32>, vector<16x64xf32> -> vector<16x64xf32>
    %c0_3 = arith.constant 0 : index
    %c0_4 = arith.constant 0 : index
    %3 = vector.load %arg5[%c0_3, %c0_4] : memref<1x64xf32, #tpu.memory_space<vmem>>, vector<1x64xf32>
    %4 = vector.broadcast %3 : vector<1x64xf32> to vector<16x64xf32>
    %5 = arith.addf %2, %4 : vector<16x64xf32>
    %c0_5 = arith.constant 0 : index
    %c0_6 = arith.constant 0 : index
    %6 = vector.load %arg6[%c0_5, %c0_6] : memref<16x64xf32, #tpu.memory_space<vmem>>, vector<16x64xf32>
    tpu.vector_store %arg6[%c0_5, %c0_6], %5 {strides = array<i32>} : memref<16x64xf32, #tpu.memory_space<vmem>>, vector<16x64xf32>,
    return
  }
  func.func @transform_0(%arg0: i32, %arg1: i32, %arg2: i32) -> (i32, i32) {
    %c0_i32 = arith.constant 0 : i32
    return %arg0, %arg2 : i32, i32
  }
  func.func @transform_1(%arg0: i32, %arg1: i32, %arg2: i32) -> (i32, i32) {
    %c0_i32 = arith.constant 0 : i32
    return %arg2, %arg1 : i32, i32
  }
  func.func @transform_2(%arg0: i32, %arg1: i32, %arg2: i32) -> (i32, i32) {
    %c0_i32 = arith.constant 0 : i32
    %c0_i32_0 = arith.constant 0 : i32
    return %c0_i32, %arg1 : i32, i32
  }
  func.func @transform_3(%arg0: i32, %arg1: i32, %arg2: i32) -> (i32, i32) {
    %c0_i32 = arith.constant 0 : i32
    return %arg0, %arg1 : i32, i32
  }
}

</mosaic_0001>

<bundles_post_ra>
// kernel: tpu_custom_call.1
= control target key start
LH: loop header
LB: loop body
LE: loop exit
PB: predicated region body
PF: predicated region fallthrough
CT: control target
= control target key end

     0   :  { %8 = vsyncpa [#allocation3], 0  ;;  %s937_s0 = inlined_call_operand.hbm [shape: f32[16,32], index: 0, kind: input, shape index: {}]   ;;  %s938_s1 = inlined_call_operand.hbm [shape: f32[32,64], index: 1, kind: input, shape index: {}]   ;;  %s939_s2 = inlined_call_operand.vmem [shape: f32[1,64], index: 2, kind: input, shape index: {}]   ;;  %s940_s3 = inlined_call_operand.hbm [shape: f32[16,64], index: 3, kind: output, shape index: {}]  }
   0x1   :  { %9 = vsyncpa [#allocation6], 0 }
   0x2   :  { %10 = vsyncpa [#allocation4], 0  ;;  %s852_s12 = smov [#allocation2]   ;;  %s780_s16 = scalar_lea.hbm %s937_s0, 256 }
   0x3   :  { %s16_s13 = sshll.u32 %s852_s12, 4  ;;  %p781_p0 = scmp.ne.s32.totalorder %s937_s0, %s780_s16  ;;  %s17_s13 = int_to_ptr.vmem [resolvable:$true] %s16_s13 }
   0x4   :  { %p784_p1 = scmp.lt.u32.totalorder %s780_s16, %s937_s0 }
   0x6   :  { %p786_p2 = pnand %p784_p1, %p781_p0 }
   0x8   :  { %789 = shalt.err (!%p786_p2)
}
   0x9   :  { %s790_s21 = scalar_lea.vmem %s17_s13, 256  ;;  %p795_p4 = scmp.lt.s32.totalorder %s17_s13, %s17_s13 }
   0xa   :  { %p791_p3 = scmp.ne.s32.totalorder %s17_s13, %s790_s21  ;;  %p796_p5 = scmp.lt.s32.totalorder %s790_s21, %s790_s21 }
   0xc   :  { %p797_p6 = por %p796_p5, %p795_p4 }
   0xe   :  { %p798_p7 = pnand %p797_p6, %p791_p3 }
  0x10   :  { %801 = shalt.err (!%p798_p7)
}
  0x11   :  { %s853_s22 = smov 128   ;;  %s854_s23 = smov 8  }
  0x12   :  { %22 = dma.hbm_to_vmem [thread:$0]  %s937_s0, 256, %s17_s13, [#allocation3], %s853_s22, %s853_s22, %s854_s23  }
  0x13   :  { %s855_s26 = smov [#allocation5]   ;;  %s802_s30 = scalar_lea.hbm %s938_s1, 512 }
  0x14   :  { %s28_s27 = sshll.u32 %s855_s26, 4  ;;  %p803_p8 = scmp.ne.s32.totalorder %s938_s1, %s802_s30  ;;  %s29_s27 = int_to_ptr.vmem [resolvable:$true] %s28_s27 }
  0x15   :  { %p806_p9 = scmp.lt.u32.totalorder %s802_s30, %s938_s1 }
  0x17   :  { %p808_p10 = pnand %p806_p9, %p803_p8 }
  0x19   :  { %811 = shalt.err (!%p808_p10)
}
  0x1a   :  { %s812_s8 = scalar_lea.vmem %s29_s27, 512  ;;  %p817_p12 = scmp.lt.s32.totalorder %s29_s27, %s29_s27 }
  0x1b   :  { %p813_p11 = scmp.ne.s32.totalorder %s29_s27, %s812_s8  ;;  %p818_p13 = scmp.lt.s32.totalorder %s812_s8, %s812_s8 }
  0x1d   :  { %p819_p0 = por %p818_p13, %p817_p12 }
  0x1f   :  { %p820_p1 = pnand %p819_p0, %p813_p11 }
  0x21   :  { %823 = shalt.err (!%p820_p1)
}
  0x22   :  { %34 = dma.hbm_to_vmem [thread:$0]  %s938_s1, 512, %s29_s27, [#allocation6], %s853_s22, %s853_s22, %s854_s23  }
  0x23   :  { %846 = dma.done.wait [#allocation3], 256  }
  0x24   :  { %847 = vsyncadd [#allocation3], 4294967040 }
  0x25   :  { %848 = dma.done.wait [#allocation6], 512  }
  0x26   :  { %849 = vsyncadd [#allocation6], 4294966784  ;;  %vm56_vm0 = vcmask 261120   ;;  %v45_v0 = vld [vmem:[#allocation5] sm:$0xff]  ;;  %v46_v1 = vld [vmem:[#allocation5 + $0x8] sm:$0xff]  ;;  %s856_s11 = smov [#allocation7]  }
  0x27   :  { %v47_v2 = vld [vmem:[#allocation5 + $0x10] sm:$0xff]  ;;  %v64_v3 = vand.u32 4294901760, %v45_v0  ;;  %v67_v4 = vand.u32 4294901760, %v46_v1  ;;  %v48_v5 = vld [vmem:[#allocation5 + $0x18] sm:$0xff]  ;;  %s599_s12 = sshll.u32 %s856_s11, 4  ;;  %vm591_vm1 = vcmask 523264   ;;  %s600_s12 = int_to_ptr.vmem [resolvable:$true] %s599_s12 }
  0x28   :  { %v70_v6 = vand.u32 4294901760, %v47_v2  ;;  %v43_v7 = vld [vmem:[#allocation2] sm:$0xff]  ;;  %v44_v8 = vld [vmem:[#allocation2 + $0x8] sm:$0xff]  ;;  %v73_v9 = vand.u32 4294901760, %v48_v5  ;;  %s824_s13 = scalar_lea.vmem %s600_s12, 256  ;;  %p829_p3 = scmp.lt.s32.totalorder %s600_s12, %s600_s12 }
  0x29   :  { %v58_v10 = vsel %vm56_vm0, %v43_v7, 0  ;;  %v61_v11 = vsel %vm56_vm0, %v44_v8, 0  ;;  %v715_v12 = vpack.c.bf16 %v67_v4, %v64_v3  ;;  %v154_v15 = vsub.f32 %v45_v0, %v64_v3  ;;  %v612_v46 = vld [vmem:[%s939_s2] ss:$0 sm:$0xff]  ;;  %p825_p2 = scmp.ne.s32.totalorder %s600_s12, %s824_s13  ;;  %p830_p4 = scmp.lt.s32.totalorder %s824_s13, %s824_s13 }
  0x2a   :  { %v907_v13 = vand.u32 4294901760, %v58_v10  ;;  %v909_v14 = vand.u32 4294901760, %v61_v11  ;;  %v719_v16 = vpack.c.bf16 %v73_v9, %v70_v6  ;;  %v161_v17 = vsub.f32 %v46_v1, %v67_v4 }
  0x2b   :  { %v168_v18 = vsub.f32 %v47_v2, %v70_v6  ;;  %v175_v19 = vsub.f32 %v48_v5, %v73_v9  ;;  %716 = vmatprep.subr.bf16.mxu1 %v715_v12  ;;  %740 = vmatprep.subr.bf16.mxu0 %v715_v12  ;;  %v155_v22 = vand.u32 4294901760, %v154_v15  ;;  %p831_p5 = por %p830_p4, %p829_p3 }
  0x2c   :  { %v133_v20 = vsub.f32 %v58_v10, %v907_v13  ;;  %v143_v21 = vsub.f32 %v61_v11, %v909_v14  ;;  %718 = vmatpush3.bf16.msra.mxu1 %v715_v12  ;;  %742 = vmatpush3.bf16.msra.mxu0 %v715_v12  ;;  %v162_v23 = vand.u32 4294901760, %v161_v17  ;;  %v731_v44 = vpack.c.bf16 %v161_v17, %v154_v15 }
  0x2d   :  { %v169_v24 = vand.u32 4294901760, %v168_v18  ;;  %v176_v25 = vand.u32 4294901760, %v175_v19  ;;  %720 = vmatprep.subr.bf16.mxu1 %v719_v16  ;;  %744 = vmatprep.subr.bf16.mxu0 %v719_v16  ;;  %v156_v28 = vsub.f32 %v154_v15, %v155_v22  ;;  %v735_v45 = vpack.c.bf16 %v175_v19, %v168_v18  ;;  %p832_p6 = pnand %p831_p5, %p825_p2 }
  0x2e   :  { %v134_v26 = vand.u32 4294901760, %v133_v20  ;;  %v144_v27 = vand.u32 4294901760, %v143_v21  ;;  %v163_v29 = vsub.f32 %v161_v17, %v162_v23  ;;  %v747_v30 = vpack.c.bf16 %v162_v23, %v155_v22 }
  0x2f   :  { %v170_v31 = vsub.f32 %v168_v18, %v169_v24  ;;  %v177_v32 = vsub.f32 %v175_v19, %v176_v25  ;;  %v157_v35 = vand.u32 4294901760, %v156_v28  ;;  %v751_v43 = vpack.c.bf16 %v176_v25, %v169_v24 }
  0x30   :  { %v135_v33 = vsub.f32 %v133_v20, %v134_v26  ;;  %690 = vmatprep.mubr.f32.mxu0 %v134_v26  ;;  %v145_v34 = vsub.f32 %v143_v21, %v144_v27  ;;  %722 = vmatpush3.bf16.msra.mxu1 %v719_v16  ;;  %v164_v36 = vand.u32 4294901760, %v163_v29 }
  0x31   :  { %746 = vmatpush3.bf16.msra.mxu0 %v719_v16  ;;  %v171_v37 = vand.u32 4294901760, %v170_v31  ;;  %v178_v38 = vand.u32 4294901760, %v177_v32 }
  0x32   :  { %v136_v39 = vand.u32 4294901760, %v135_v33  ;;  %v146_v40 = vand.u32 4294901760, %v145_v34  ;;  %748 = vmatprep.subr.bf16.mxu0 %v747_v30  ;;  %v723_v41 = vpack.c.bf16 %v164_v36, %v157_v35 }
  0x33   :  { %v727_v42 = vpack.c.bf16 %v178_v38, %v171_v37 }
  0x34   :  { %657 = vmatprep.mubr.f32.mxu1 %v136_v39  ;;  %691 = vmatmul.mubr.f32.vlgmr.msra.gmra.mrb[0].mxu0 %v144_v27 }
  0x35   :  { %658 = vmatmul.mubr.f32.vlgmr.msra.gmra.mrb[0].mxu1 %v146_v40  ;;  %724 = vmatprep.subr.bf16.mxu1 %v723_v41 }
  0x36   :  { %726 = vmatpush3.bf16.msra.mxu1 %v723_v41  ;;  %750 = vmatpush3.bf16.msra.mxu0 %v747_v30 }
  0x37   :  { %728 = vmatprep.subr.bf16.mxu1 %v727_v42  ;;  %752 = vmatprep.subr.bf16.mxu0 %v751_v43 }
  0x38   :  { %668 = vmatprep.mubr.f32.mxu1 %v907_v13  ;;  %701 = vmatprep.mubr.f32.mxu0 %v907_v13 }
  0x3a   :  { %730 = vmatpush3.bf16.msra.mxu1 %v727_v42  ;;  %754 = vmatpush3.bf16.msra.mxu0 %v751_v43 }
  0x3b   :  { %732 = vmatprep.subr.bf16.mxu1 %v731_v44  ;;  %756 = vmatprep.subr.bf16.mxu0 %v715_v12 }
  0x3d   :  { %669 = vmatmul.mubr.f32.vlgmr.msra.gmra.mrb[0].mxu1 %v909_v14  ;;  %702 = vmatmul.mubr.f32.vlgmr.msra.gmra.mrb[0].mxu0 %v909_v14 }
  0x3e   :  { %734 = vmatpush3.bf16.msra.mxu1 %v731_v44  ;;  %758 = vmatpush3.bf16.msra.mxu0 %v715_v12 }
  0x3f   :  { %736 = vmatprep.subr.bf16.mxu1 %v735_v45  ;;  %760 = vmatprep.subr.bf16.mxu0 %v719_v16 }
  0x40   :  { %679 = vmatprep.mubr.f32.mxu1 %v133_v20  ;;  %712 = vmatprep.mubr.f32.mxu0 %v907_v13 }
  0x42   :  { %738 = vmatpush3.bf16.msra.mxu1 %v735_v45  ;;  %762 = vmatpush3.bf16.msra.mxu0 %v719_v16 }
  0x45   :  { %680 = vmatmul.mubr.f32.vlgmr.msra.gmra.mrb[0].mxu1 %v143_v21  ;;  %713 = vmatmul.mubr.f32.vlgmr.msra.gmra.mrb[0].mxu0 %v909_v14 }
 0x118   :  { %v681_v47 = vpop.f32.mrb[0].mxu1  ;;  %v714_v48 = vpop.f32.mrb[0].mxu0 }
 0x119   :  { %v763_v49 = vadd.f32 %v681_v47, %v612_v46  ;;  %v325_v50 = vpop.f32.mrb[1].mxu1  ;;  %v581_v51 = vpop.f32.mrb[1].mxu0 }
 0x11a   :  { %v765_v52 = vadd.f32 %v612_v46, %v325_v50 }
 0x11b   :  { %v764_v53 = vadd.f32 %v763_v49, %v714_v48 }
 0x11c   :  { %v766_v54 = vadd.f32 %v765_v52, %v581_v51 }
 0x11d   :  { %593 = vst.msk [vmem:[#allocation7 + $0x8] sm:$0xff] %vm591_vm1, %v764_v53 }
 0x11e   :  { %592 = vst.msk [vmem:[#allocation7] sm:$0xff] %vm591_vm1, %v766_v54 }
 0x11f   :  { %835 = shalt.err (!%p832_p6)
}
 0x120   :  { %s836_s15 = scalar_lea.hbm %s940_s3, 256 }
 0x121   :  { %p837_p7 = scmp.ne.s32.totalorder %s940_s3, %s836_s15  ;;  %p840_p8 = scmp.lt.u32.totalorder %s836_s15, %s940_s3 }
 0x123   :  { %p842_p9 = pnand %p840_p8, %p837_p7 }
 0x125   :  { %845 = shalt.err (!%p842_p9)
}
 0x126   :  { %605 = dma.vmem_to_hbm [thread:$0]  %s600_s12, 256, %s940_s3, [#allocation4], %s853_s22, %s853_s22, %s854_s23  }
 0x127   :  { %850 = dma.done.wait [#allocation4], 256  }
 0x128   :  { %851 = vsyncadd [#allocation4], 4294967040 }
 0x129   :  { %609 = vsyncpa [#allocation3], 1 }
 0x12a   :  { %610 = vsyncpa [#allocation6], 1 }
 0x12b   :  { %611 = vsyncpa [#allocation4], 1 }

</bundles_post_ra>
